<compile_context>
chip_gen: v5e
topology: v5e:2x2
jax: 0.10.0
libtpu: 0.0.40
codegen_flags: <defaults>
</compile_context>

<pallas_src>
import functools

import jax
import jax.numpy as jnp
from jax import lax
from jax.experimental import pallas as pl
from jax.experimental.pallas import tpu as pltpu


def _round_up(n, m):
    return ((n + m - 1) // m) * m


def _pick_unroll(chunk):
    if chunk <= 8:
        return max(1, chunk)
    for u in (8, 4, 2):
        if chunk % u == 0:
            return u
    return 1


def _elman_chunk_kernel(x_ref, wx_ref, wh_ref, brnn_ref, wfc_ref, bfc_ref,
                        h0_ref, out_ref, hT_ref, h_ref, hist_ref,
                        *, seq_len, chunk, num_chunks, unroll):
    """One grid step == one chunk of `chunk` RNN time steps."""
    c = pl.program_id(0)

    @pl.when(c == 0)
    def _():
        h_ref[...] = h0_ref[...]

    Tc, Bp, I = x_ref.shape
    Hp = wh_ref.shape[0]
    O = wfc_ref.shape[1]

    # (1) Input projection for the whole chunk: one big MXU matmul hoisted out
    #     of the serial recurrence. RNN bias folded in here (broadcast once).
    x_flat = x_ref[...].reshape(Tc * Bp, I)
    xw = jnp.dot(x_flat, wx_ref[...], preferred_element_type=jnp.float32)
    hist_ref[...] = xw.reshape(Tc, Bp, Hp) + brnn_ref[...]

    wh = wh_ref[...]

    # (2) Serial recurrence: only an (Bp,Hp)@(Hp,Hp) matmul + tanh per step.
    def run_recurrence(masked):
        def step(t, h):
            pre = jnp.dot(h, wh, preferred_element_type=jnp.float32) + hist_ref[t]
            h_new = jnp.tanh(pre)
            if masked:
                # Freeze h on zero-padded trailing steps of the last chunk.
                h_new = jnp.where(c * chunk + t < seq_len, h_new, h)
            hist_ref[t] = h_new          # reuse the xw buffer as the h history
            return h_new
        h_last = lax.fori_loop(0, chunk, step, h_ref[...], unroll=unroll)
        h_ref[...] = h_last              # carry hidden state across chunks

    has_pad_steps = (chunk * num_chunks) != seq_len   # static Python bool
    if has_pad_steps:
        # Only the last chunk can contain padded steps; full chunks run the
        # cheaper unmasked loop (no per-step compare+select on the serial path).
        @pl.when(c == num_chunks - 1)
        def _():
            run_recurrence(True)

        @pl.when(c != num_chunks - 1)
        def _():
            run_recurrence(False)
    else:
        run_recurrence(False)

    # Final-hidden output: only the last chunk's value is meaningful.
    @pl.when(c == num_chunks - 1)
    def _():
        hT_ref[...] = h_ref[...]

    # (3) Batched FC projection over all steps of the chunk: one matmul and one
    #     contiguous store instead of `chunk` tiny (B,H)@(H,O) ones.
    h_all = hist_ref[...].reshape(Tc * Bp, Hp).astype(wfc_ref.dtype)
    out = jnp.dot(h_all, wfc_ref[...], preferred_element_type=jnp.float32)
    out_ref[...] = (out + bfc_ref[...]).reshape(Tc, Bp, O)


def elman_rnn_forward(x, params, history=None, *, chunk=None,
                      matmul_dtype=jnp.float32):
    """x: [B, T, I] float32. Returns (outputs [B, T, O], [hidden [B, H]])."""
    B, T, I = x.shape
    w_rnn, b_rnn, w_fc, b_fc = params          # torch nn.Linear layouts
    H = w_rnn.shape[0]
    O = w_fc.shape[0]

    f32 = jnp.float32
    mm_dt = matmul_dtype                       # dtype of the two big matmuls

    # Pad batch to a sublane multiple and hidden to a lane multiple. Input (I)
    # and output (O) lane dims stay UN-padded in HBM (full-dim blocks legal).
    Bp = _round_up(B, 8)
    Hp = _round_up(H, 128)

    # Chunk heuristic: budget ~24 MiB of VMEM (safe under v7x's 32 MiB scoped)
    # for 2x x-chunk + 2x out-chunk + hist scratch + 2x resident weights.
    x_bytes = jnp.dtype(mm_dt).itemsize
    per_step_bytes = Bp * (I * x_bytes * 2 + O * 4 * 2 + Hp * 4)
    weight_bytes = 2 * 4 * (I * Hp + Hp * Hp + Hp * O + 2 * Hp + 2 * O + Bp * Hp)
    vmem_budget = 24 * 1024 * 1024
    if chunk is None:
        chunk = max(1, min(T, 1024,
                           (vmem_budget - weight_bytes) // per_step_bytes))
        if chunk > 8:
            chunk = (chunk // 8) * 8           # keep unroll=8 exact
    num_chunks = -(-T // chunk)
    Tp = num_chunks * chunk
    unroll = _pick_unroll(chunk)

    # torch: y = z @ W^T + b, with W_rnn: [H, I+H] acting on cat(x_t, h).
    w_rnn_t = jnp.asarray(w_rnn, f32).T                        # [I+H, H]
    wx = jnp.zeros((I, Hp), f32).at[:, :H].set(w_rnn_t[:I]).astype(mm_dt)
    wh = jnp.zeros((Hp, Hp), f32).at[:H, :H].set(w_rnn_t[I:])
    wfc = jnp.zeros((Hp, O), f32).at[:H, :].set(jnp.asarray(w_fc, f32).T)
    wfc = wfc.astype(mm_dt)
    brnn = jnp.zeros((1, Hp), f32).at[0, :H].set(jnp.asarray(b_rnn, f32))
    bfc = jnp.asarray(b_fc, f32).reshape(1, O)

    h0 = jnp.zeros((Bp, Hp), f32)
    if history is not None:
        h0 = h0.at[:B, :H].set(jnp.asarray(history[0], f32))

    # [B, T, I] -> padded, time-major [Tp, Bp, I]: each chunk is one dense
    # (chunk, Bp, I) tile; only T and B are padded.
    x_tbi = jnp.transpose(jnp.asarray(x, f32), (1, 0, 2))
    x_tbi = jnp.pad(x_tbi, ((0, Tp - T), (0, Bp - B), (0, 0))).astype(mm_dt)

    kernel = functools.partial(_elman_chunk_kernel, seq_len=T, chunk=chunk,
                               num_chunks=num_chunks, unroll=unroll)

    out_tbo, h_final = pl.pallas_call(
        kernel,
        out_shape=(
            jax.ShapeDtypeStruct((Tp, Bp, O), f32),
            jax.ShapeDtypeStruct((Bp, Hp), f32),
        ),
        grid_spec=pltpu.PrefetchScalarGridSpec(
            num_scalar_prefetch=0,
            grid=(num_chunks,),
            in_specs=[
                pl.BlockSpec((chunk, Bp, I), lambda c: (c, 0, 0)),  # x chunk
                pl.BlockSpec((I, Hp), lambda c: (0, 0)),            # Wx
                pl.BlockSpec((Hp, Hp), lambda c: (0, 0)),           # Wh
                pl.BlockSpec((1, Hp), lambda c: (0, 0)),            # b_rnn
                pl.BlockSpec((Hp, O), lambda c: (0, 0)),            # W_fc
                pl.BlockSpec((1, O), lambda c: (0, 0)),             # b_fc
                pl.BlockSpec((Bp, Hp), lambda c: (0, 0)),           # h0
            ],
            out_specs=[
                pl.BlockSpec((chunk, Bp, O), lambda c: (c, 0, 0)),  # outputs
                pl.BlockSpec((Bp, Hp), lambda c: (0, 0)),           # final h
            ],
            scratch_shapes=[
                pltpu.VMEM((Bp, Hp), f32),           # carried hidden state
                pltpu.VMEM((chunk, Bp, Hp), f32),    # xw + bias / h history
            ],
        ),
        compiler_params=pltpu.CompilerParams(
            dimension_semantics=("arbitrary",),
            vmem_limit_bytes=32 * 1024 * 1024),
    )(x_tbi, wx, wh, brnn, wfc, bfc, h0)

    outputs = jnp.transpose(out_tbo[:T, :B, :], (1, 0, 2))     # [B, T, O]
    return outputs, [h_final[:B, :H]]


def _reference(x, params, history=None):
    """Pure-JAX reference mirroring the PyTorch forward."""
    B, T, I = x.shape
    w_rnn, b_rnn, w_fc, b_fc = params
    H = w_rnn.shape[0]
    h = jnp.zeros((B, H), jnp.float32) if history is None else history[0]

    def step(h, x_t):
        combined = jnp.concatenate([x_t, h], axis=1)
        h_new = jnp.tanh(combined @ w_rnn.T + b_rnn)
        out = h_new @ w_fc.T + b_fc
        return h_new, out

    h_final, outs = jax.lax.scan(step, h, jnp.transpose(x, (1, 0, 2)))
    return jnp.transpose(outs, (1, 0, 2)), [h_final]


if __name__ == "__main__":
    # Small shapes consistent with the module: B=2, T=8, I=16, H=32, O=8.
    B, T, I, H, O = 2, 8, 16, 32, 8
    key = jax.random.PRNGKey(0)
    k_x, k_wr, k_br, k_wf, k_bf, k_h = jax.random.split(key, 6)

    x = jax.random.normal(k_x, (B, T, I), dtype=jnp.float32)
    w_rnn = 0.1 * jax.random.normal(k_wr, (H, I + H), dtype=jnp.float32)
    b_rnn = 0.1 * jax.random.normal(k_br, (H,), dtype=jnp.float32)
    w_fc = 0.1 * jax.random.normal(k_wf, (O, H), dtype=jnp.float32)
    b_fc = 0.1 * jax.random.normal(k_bf, (O,), dtype=jnp.float32)
    params = (w_rnn, b_rnn, w_fc, b_fc)

    ref_out, (ref_h,) = _reference(x, params)

    # 1) Default f32 path: single chunk, whole sequence in one kernel step.
    outputs, (hidden,) = elman_rnn_forward(x, params)
    outputs = jax.block_until_ready(outputs)
    hidden = jax.block_until_ready(hidden)
    assert outputs.shape == (B, T, O) and hidden.shape == (B, H)
    assert jnp.allclose(outputs, ref_out, atol=1e-5, rtol=1e-5)
    assert jnp.allclose(hidden, ref_h, atol=1e-5, rtol=1e-5)

    # 2) Chunked path (T not divisible by chunk) with a provided history:
    #    exercises the masked last chunk + unmasked full chunks.
    h_init = 0.1 * jax.random.normal(k_h, (B, H), dtype=jnp.float32)
    outputs2, (hidden2,) = elman_rnn_forward(x, params, history=[h_init], chunk=3)
    outputs2 = jax.block_until_ready(outputs2)
    hidden2 = jax.block_until_ready(hidden2)
    ref_out2, (ref_h2,) = _reference(x, params, history=[h_init])
    assert jnp.allclose(outputs2, ref_out2, atol=1e-5, rtol=1e-5)
    assert jnp.allclose(hidden2, ref_h2, atol=1e-5, rtol=1e-5)

    # 3) bf16 input-projection / FC matmuls (halves x DMA bytes, ~2x MXU
    #    throughput on the hoisted matmuls); recurrence stays f32.
    outputs3, (hidden3,) = elman_rnn_forward(x, params, matmul_dtype=jnp.bfloat16)
    outputs3 = jax.block_until_ready(outputs3)
    hidden3 = jax.block_until_ready(hidden3)
    assert jnp.allclose(outputs3, ref_out, atol=5e-2, rtol=5e-2)
    assert jnp.allclose(hidden3, ref_h, atol=5e-2, rtol=5e-2)

    print("KERNEL_OK")
</pallas_src>

<mosaic_0001>
module attributes {stable_mosaic.version = 11 : i64} {
  func.func @_elman_chunk_kernel(%arg0: i32, %arg1: memref<8x8x16xf32, #tpu.memory_space<vmem>>, %arg2: memref<16x128xf32, #tpu.memory_space<vmem>>, %arg3: memref<128x128xf32, #tpu.memory_space<vmem>>, %arg4: memref<1x128xf32, #tpu.memory_space<vmem>>, %arg5: memref<128x8xf32, #tpu.memory_space<vmem>>, %arg6: memref<1x8xf32, #tpu.memory_space<vmem>>, %arg7: memref<8x128xf32, #tpu.memory_space<vmem>>, %arg8: memref<8x8x8xf32, #tpu.memory_space<vmem>>, %arg9: memref<8x128xf32, #tpu.memory_space<vmem>>, %arg10: memref<8x128xf32, #tpu.memory_space<vmem>>, %arg11: memref<8x8x128xf32, #tpu.memory_space<vmem>>) attributes {dimension_semantics = [#tpu.dimension_semantics<arbitrary>], iteration_bounds = array<i64: 1>, scalar_prefetch = 0 : i64, scratch_operands = 2 : i64, tpu.core_type = #tpu.core_type<tc>, window_params = [{transform_indices = @transform_0, window_bounds = array<i64: 8, 8, 16>}, {pipeline_mode = #tpu.pipeline_mode<synchronous>, transform_indices = @transform_1, window_bounds = array<i64: 16, 128>}, {pipeline_mode = #tpu.pipeline_mode<synchronous>, transform_indices = @transform_2, window_bounds = array<i64: 128, 128>}, {pipeline_mode = #tpu.pipeline_mode<synchronous>, transform_indices = @transform_3, window_bounds = array<i64: 1, 128>}, {pipeline_mode = #tpu.pipeline_mode<synchronous>, transform_indices = @transform_4, window_bounds = array<i64: 128, 8>}, {pipeline_mode = #tpu.pipeline_mode<synchronous>, transform_indices = @transform_5, window_bounds = array<i64: 1, 8>}, {pipeline_mode = #tpu.pipeline_mode<synchronous>, transform_indices = @transform_6, window_bounds = array<i64: 8, 128>}, {transform_indices = @transform_7, window_bounds = array<i64: 8, 8, 8>}, {pipeline_mode = #tpu.pipeline_mode<synchronous>, transform_indices = @transform_8, window_bounds = array<i64: 8, 128>}]} {
    %c0_i32 = arith.constant 0 : i32
    %0 = arith.cmpi eq, %arg0, %c0_i32 : i32
    %1 = arith.extui %0 : i1 to i32
    %c0_i32_0 = arith.constant 0 : i32
    %2 = arith.cmpi ne, %1, %c0_i32_0 : i32
    scf.if %2 {
      %c0_70 = arith.constant 0 : index
      %c0_71 = arith.constant 0 : index
      %108 = vector.load %arg7[%c0_70, %c0_71] : memref<8x128xf32, #tpu.memory_space<vmem>>, vector<8x128xf32>
      %c0_72 = arith.constant 0 : index
      %c0_73 = arith.constant 0 : index
      %109 = vector.load %arg10[%c0_72, %c0_73] : memref<8x128xf32, #tpu.memory_space<vmem>>, vector<8x128xf32>
      tpu.vector_store %arg10[%c0_72, %c0_73], %108 {strides = array<i32>} : memref<8x128xf32, #tpu.memory_space<vmem>>, vector<8x128xf32>,
    } else {
    }
    %c0 = arith.constant 0 : index
    %c0_1 = arith.constant 0 : index
    %c0_2 = arith.constant 0 : index
    %3 = vector.load %arg1[%c0, %c0_1, %c0_2] : memref<8x8x16xf32, #tpu.memory_space<vmem>>, vector<8x8x16xf32>
    %4 = vector.shape_cast %3 : vector<8x8x16xf32> to vector<64x16xf32>
    %c0_3 = arith.constant 0 : index
    %c0_4 = arith.constant 0 : index
    %5 = vector.load %arg2[%c0_3, %c0_4] : memref<16x128xf32, #tpu.memory_space<vmem>>, vector<16x128xf32>
    %cst = arith.constant dense<0.000000e+00> : vector<64x128xf32>
    %6 = tpu.matmul %4, %5, %cst {dimension_numbers = #tpu.dot_dimension_numbers<[1], [0], [0], [1], [0, 0, 1, 1], [], []>} : vector<64x16xf32>, vector<16x128xf32>, vector<64x128xf32> -> vector<64x128xf32>
    %7 = vector.shape_cast %6 : vector<64x128xf32> to vector<8x8x128xf32>
    %c0_5 = arith.constant 0 : index
    %c0_6 = arith.constant 0 : index
    %8 = vector.load %arg4[%c0_5, %c0_6] : memref<1x128xf32, #tpu.memory_space<vmem>>, vector<1x128xf32>
    %9 = vector.shape_cast %8 : vector<1x128xf32> to vector<1x1x128xf32>
    %10 = vector.broadcast %9 : vector<1x1x128xf32> to vector<8x8x128xf32>
    %11 = arith.addf %7, %10 : vector<8x8x128xf32>
    %c0_7 = arith.constant 0 : index
    %c0_8 = arith.constant 0 : index
    %c0_9 = arith.constant 0 : index
    %12 = vector.load %arg11[%c0_7, %c0_8, %c0_9] : memref<8x8x128xf32, #tpu.memory_space<vmem>>, vector<8x8x128xf32>
    tpu.vector_store %arg11[%c0_7, %c0_8, %c0_9], %11 {strides = array<i32>} : memref<8x8x128xf32, #tpu.memory_space<vmem>>, vector<8x8x128xf32>,
    %c0_10 = arith.constant 0 : index
    %c0_11 = arith.constant 0 : index
    %13 = vector.load %arg3[%c0_10, %c0_11] : memref<128x128xf32, #tpu.memory_space<vmem>>, vector<128x128xf32>
    %c0_12 = arith.constant 0 : index
    %c0_13 = arith.constant 0 : index
    %14 = vector.load %arg10[%c0_12, %c0_13] : memref<8x128xf32, #tpu.memory_space<vmem>>, vector<8x128xf32>
    %c0_i32_14 = arith.constant 0 : i32
    %cst_15 = arith.constant dense<0.000000e+00> : vector<8x128xf32>
    %15 = tpu.matmul %14, %13, %cst_15 {dimension_numbers = #tpu.dot_dimension_numbers<[1], [0], [0], [1], [0, 0, 1, 1], [], []>} : vector<8x128xf32>, vector<128x128xf32>, vector<8x128xf32> -> vector<8x128xf32>
    %16 = arith.index_cast %c0_i32_14 : i32 to index
    %c0_16 = arith.constant 0 : index
    %c0_17 = arith.constant 0 : index
    %17 = vector.load %arg11[%16, %c0_16, %c0_17] : memref<8x8x128xf32, #tpu.memory_space<vmem>>, vector<1x8x128xf32>
    %18 = vector.shape_cast %17 : vector<1x8x128xf32> to vector<8x128xf32>
    %19 = arith.addf %15, %18 : vector<8x128xf32>
    %20 = math.tanh %19 : vector<8x128xf32>
    %21 = arith.index_cast %c0_i32_14 : i32 to index
    %c0_18 = arith.constant 0 : index
    %c0_19 = arith.constant 0 : index
    %22 = vector.load %arg11[%21, %c0_18, %c0_19] : memref<8x8x128xf32, #tpu.memory_space<vmem>>, vector<1x8x128xf32>
    %23 = vector.shape_cast %22 : vector<1x8x128xf32> to vector<8x128xf32>
    %24 = vector.shape_cast %20 : vector<8x128xf32> to vector<1x8x128xf32>
    tpu.vector_store %arg11[%21, %c0_18, %c0_19], %24 {strides = array<i32>} : memref<8x8x128xf32, #tpu.memory_space<vmem>>, vector<1x8x128xf32>,
    %c1_i32 = arith.constant 1 : i32
    %cst_20 = arith.constant dense<0.000000e+00> : vector<8x128xf32>
    %25 = tpu.matmul %20, %13, %cst_20 {dimension_numbers = #tpu.dot_dimension_numbers<[1], [0], [0], [1], [0, 0, 1, 1], [], []>} : vector<8x128xf32>, vector<128x128xf32>, vector<8x128xf32> -> vector<8x128xf32>
    %26 = arith.index_cast %c1_i32 : i32 to index
    %c0_21 = arith.constant 0 : index
    %c0_22 = arith.constant 0 : index
    %27 = vector.load %arg11[%26, %c0_21, %c0_22] : memref<8x8x128xf32, #tpu.memory_space<vmem>>, vector<1x8x128xf32>
    %28 = vector.shape_cast %27 : vector<1x8x128xf32> to vector<8x128xf32>
    %29 = arith.addf %25, %28 : vector<8x128xf32>
    %30 = math.tanh %29 : vector<8x128xf32>
    %31 = arith.index_cast %c1_i32 : i32 to index
    %c0_23 = arith.constant 0 : index
    %c0_24 = arith.constant 0 : index
    %32 = vector.load %arg11[%31, %c0_23, %c0_24] : memref<8x8x128xf32, #tpu.memory_space<vmem>>, vector<1x8x128xf32>
    %33 = vector.shape_cast %32 : vector<1x8x128xf32> to vector<8x128xf32>
    %34 = vector.shape_cast %30 : vector<8x128xf32> to vector<1x8x128xf32>
    tpu.vector_store %arg11[%31, %c0_23, %c0_24], %34 {strides = array<i32>} : memref<8x8x128xf32, #tpu.memory_space<vmem>>, vector<1x8x128xf32>,
    %c2_i32 = arith.constant 2 : i32
    %cst_25 = arith.constant dense<0.000000e+00> : vector<8x128xf32>
    %35 = tpu.matmul %30, %13, %cst_25 {dimension_numbers = #tpu.dot_dimension_numbers<[1], [0], [0], [1], [0, 0, 1, 1], [], []>} : vector<8x128xf32>, vector<128x128xf32>, vector<8x128xf32> -> vector<8x128xf32>
    %36 = arith.index_cast %c2_i32 : i32 to index
    %c0_26 = arith.constant 0 : index
    %c0_27 = arith.constant 0 : index
    %37 = vector.load %arg11[%36, %c0_26, %c0_27] : memref<8x8x128xf32, #tpu.memory_space<vmem>>, vector<1x8x128xf32>
    %38 = vector.shape_cast %37 : vector<1x8x128xf32> to vector<8x128xf32>
    %39 = arith.addf %35, %38 : vector<8x128xf32>
    %40 = math.tanh %39 : vector<8x128xf32>
    %41 = arith.index_cast %c2_i32 : i32 to index
    %c0_28 = arith.constant 0 : index
    %c0_29 = arith.constant 0 : index
    %42 = vector.load %arg11[%41, %c0_28, %c0_29] : memref<8x8x128xf32, #tpu.memory_space<vmem>>, vector<1x8x128xf32>
    %43 = vector.shape_cast %42 : vector<1x8x128xf32> to vector<8x128xf32>
    %44 = vector.shape_cast %40 : vector<8x128xf32> to vector<1x8x128xf32>
    tpu.vector_store %arg11[%41, %c0_28, %c0_29], %44 {strides = array<i32>} : memref<8x8x128xf32, #tpu.memory_space<vmem>>, vector<1x8x128xf32>,
    %c3_i32 = arith.constant 3 : i32
    %cst_30 = arith.constant dense<0.000000e+00> : vector<8x128xf32>
    %45 = tpu.matmul %40, %13, %cst_30 {dimension_numbers = #tpu.dot_dimension_numbers<[1], [0], [0], [1], [0, 0, 1, 1], [], []>} : vector<8x128xf32>, vector<128x128xf32>, vector<8x128xf32> -> vector<8x128xf32>
    %46 = arith.index_cast %c3_i32 : i32 to index
    %c0_31 = arith.constant 0 : index
    %c0_32 = arith.constant 0 : index
    %47 = vector.load %arg11[%46, %c0_31, %c0_32] : memref<8x8x128xf32, #tpu.memory_space<vmem>>, vector<1x8x128xf32>
    %48 = vector.shape_cast %47 : vector<1x8x128xf32> to vector<8x128xf32>
    %49 = arith.addf %45, %48 : vector<8x128xf32>
    %50 = math.tanh %49 : vector<8x128xf32>
    %51 = arith.index_cast %c3_i32 : i32 to index
    %c0_33 = arith.constant 0 : index
    %c0_34 = arith.constant 0 : index
    %52 = vector.load %arg11[%51, %c0_33, %c0_34] : memref<8x8x128xf32, #tpu.memory_space<vmem>>, vector<1x8x128xf32>
    %53 = vector.shape_cast %52 : vector<1x8x128xf32> to vector<8x128xf32>
    %54 = vector.shape_cast %50 : vector<8x128xf32> to vector<1x8x128xf32>
    tpu.vector_store %arg11[%51, %c0_33, %c0_34], %54 {strides = array<i32>} : memref<8x8x128xf32, #tpu.memory_space<vmem>>, vector<1x8x128xf32>,
    %c4_i32 = arith.constant 4 : i32
    %cst_35 = arith.constant dense<0.000000e+00> : vector<8x128xf32>
    %55 = tpu.matmul %50, %13, %cst_35 {dimension_numbers = #tpu.dot_dimension_numbers<[1], [0], [0], [1], [0, 0, 1, 1], [], []>} : vector<8x128xf32>, vector<128x128xf32>, vector<8x128xf32> -> vector<8x128xf32>
    %56 = arith.index_cast %c4_i32 : i32 to index
    %c0_36 = arith.constant 0 : index
    %c0_37 = arith.constant 0 : index
    %57 = vector.load %arg11[%56, %c0_36, %c0_37] : memref<8x8x128xf32, #tpu.memory_space<vmem>>, vector<1x8x128xf32>
    %58 = vector.shape_cast %57 : vector<1x8x128xf32> to vector<8x128xf32>
    %59 = arith.addf %55, %58 : vector<8x128xf32>
    %60 = math.tanh %59 : vector<8x128xf32>
    %61 = arith.index_cast %c4_i32 : i32 to index
    %c0_38 = arith.constant 0 : index
    %c0_39 = arith.constant 0 : index
    %62 = vector.load %arg11[%61, %c0_38, %c0_39] : memref<8x8x128xf32, #tpu.memory_space<vmem>>, vector<1x8x128xf32>
    %63 = vector.shape_cast %62 : vector<1x8x128xf32> to vector<8x128xf32>
    %64 = vector.shape_cast %60 : vector<8x128xf32> to vector<1x8x128xf32>
    tpu.vector_store %arg11[%61, %c0_38, %c0_39], %64 {strides = array<i32>} : memref<8x8x128xf32, #tpu.memory_space<vmem>>, vector<1x8x128xf32>,
    %c5_i32 = arith.constant 5 : i32
    %cst_40 = arith.constant dense<0.000000e+00> : vector<8x128xf32>
    %65 = tpu.matmul %60, %13, %cst_40 {dimension_numbers = #tpu.dot_dimension_numbers<[1], [0], [0], [1], [0, 0, 1, 1], [], []>} : vector<8x128xf32>, vector<128x128xf32>, vector<8x128xf32> -> vector<8x128xf32>
    %66 = arith.index_cast %c5_i32 : i32 to index
    %c0_41 = arith.constant 0 : index
    %c0_42 = arith.constant 0 : index
    %67 = vector.load %arg11[%66, %c0_41, %c0_42] : memref<8x8x128xf32, #tpu.memory_space<vmem>>, vector<1x8x128xf32>
    %68 = vector.shape_cast %67 : vector<1x8x128xf32> to vector<8x128xf32>
    %69 = arith.addf %65, %68 : vector<8x128xf32>
    %70 = math.tanh %69 : vector<8x128xf32>
    %71 = arith.index_cast %c5_i32 : i32 to index
    %c0_43 = arith.constant 0 : index
    %c0_44 = arith.constant 0 : index
    %72 = vector.load %arg11[%71, %c0_43, %c0_44] : memref<8x8x128xf32, #tpu.memory_space<vmem>>, vector<1x8x128xf32>
    %73 = vector.shape_cast %72 : vector<1x8x128xf32> to vector<8x128xf32>
    %74 = vector.shape_cast %70 : vector<8x128xf32> to vector<1x8x128xf32>
    tpu.vector_store %arg11[%71, %c0_43, %c0_44], %74 {strides = array<i32>} : memref<8x8x128xf32, #tpu.memory_space<vmem>>, vector<1x8x128xf32>,
    %c6_i32 = arith.constant 6 : i32
    %cst_45 = arith.constant dense<0.000000e+00> : vector<8x128xf32>
    %75 = tpu.matmul %70, %13, %cst_45 {dimension_numbers = #tpu.dot_dimension_numbers<[1], [0], [0], [1], [0, 0, 1, 1], [], []>} : vector<8x128xf32>, vector<128x128xf32>, vector<8x128xf32> -> vector<8x128xf32>
    %76 = arith.index_cast %c6_i32 : i32 to index
    %c0_46 = arith.constant 0 : index
    %c0_47 = arith.constant 0 : index
    %77 = vector.load %arg11[%76, %c0_46, %c0_47] : memref<8x8x128xf32, #tpu.memory_space<vmem>>, vector<1x8x128xf32>
    %78 = vector.shape_cast %77 : vector<1x8x128xf32> to vector<8x128xf32>
    %79 = arith.addf %75, %78 : vector<8x128xf32>
    %80 = math.tanh %79 : vector<8x128xf32>
    %81 = arith.index_cast %c6_i32 : i32 to index
    %c0_48 = arith.constant 0 : index
    %c0_49 = arith.constant 0 : index
    %82 = vector.load %arg11[%81, %c0_48, %c0_49] : memref<8x8x128xf32, #tpu.memory_space<vmem>>, vector<1x8x128xf32>
    %83 = vector.shape_cast %82 : vector<1x8x128xf32> to vector<8x128xf32>
    %84 = vector.shape_cast %80 : vector<8x128xf32> to vector<1x8x128xf32>
    tpu.vector_store %arg11[%81, %c0_48, %c0_49], %84 {strides = array<i32>} : memref<8x8x128xf32, #tpu.memory_space<vmem>>, vector<1x8x128xf32>,
    %c7_i32 = arith.constant 7 : i32
    %cst_50 = arith.constant dense<0.000000e+00> : vector<8x128xf32>
    %85 = tpu.matmul %80, %13, %cst_50 {dimension_numbers = #tpu.dot_dimension_numbers<[1], [0], [0], [1], [0, 0, 1, 1], [], []>} : vector<8x128xf32>, vector<128x128xf32>, vector<8x128xf32> -> vector<8x128xf32>
    %86 = arith.index_cast %c7_i32 : i32 to index
    %c0_51 = arith.constant 0 : index
    %c0_52 = arith.constant 0 : index
    %87 = vector.load %arg11[%86, %c0_51, %c0_52] : memref<8x8x128xf32, #tpu.memory_space<vmem>>, vector<1x8x128xf32>
    %88 = vector.shape_cast %87 : vector<1x8x128xf32> to vector<8x128xf32>
    %89 = arith.addf %85, %88 : vector<8x128xf32>
    %90 = math.tanh %89 : vector<8x128xf32>
    %91 = arith.index_cast %c7_i32 : i32 to index
    %c0_53 = arith.constant 0 : index
    %c0_54 = arith.constant 0 : index
    %92 = vector.load %arg11[%91, %c0_53, %c0_54] : memref<8x8x128xf32, #tpu.memory_space<vmem>>, vector<1x8x128xf32>
    %93 = vector.shape_cast %92 : vector<1x8x128xf32> to vector<8x128xf32>
    %94 = vector.shape_cast %90 : vector<8x128xf32> to vector<1x8x128xf32>
    tpu.vector_store %arg11[%91, %c0_53, %c0_54], %94 {strides = array<i32>} : memref<8x8x128xf32, #tpu.memory_space<vmem>>, vector<1x8x128xf32>,
    %c8_i32 = arith.constant 8 : i32
    %c0_55 = arith.constant 0 : index
    %c0_56 = arith.constant 0 : index
    %95 = vector.load %arg10[%c0_55, %c0_56] : memref<8x128xf32, #tpu.memory_space<vmem>>, vector<8x128xf32>
    tpu.vector_store %arg10[%c0_55, %c0_56], %90 {strides = array<i32>} : memref<8x128xf32, #tpu.memory_space<vmem>>, vector<8x128xf32>,
    %c0_i32_57 = arith.constant 0 : i32
    %96 = arith.cmpi eq, %arg0, %c0_i32_57 : i32
    %97 = arith.extui %96 : i1 to i32
    %c0_i32_58 = arith.constant 0 : i32
    %98 = arith.cmpi ne, %97, %c0_i32_58 : i32
    scf.if %98 {
      %c0_70 = arith.constant 0 : index
      %c0_71 = arith.constant 0 : index
      %108 = vector.load %arg10[%c0_70, %c0_71] : memref<8x128xf32, #tpu.memory_space<vmem>>, vector<8x128xf32>
      %c0_72 = arith.constant 0 : index
      %c0_73 = arith.constant 0 : index
      %109 = vector.load %arg9[%c0_72, %c0_73] : memref<8x128xf32, #tpu.memory_space<vmem>>, vector<8x128xf32>
      tpu.vector_store %arg9[%c0_72, %c0_73], %108 {strides = array<i32>} : memref<8x128xf32, #tpu.memory_space<vmem>>, vector<8x128xf32>,
    } else {
    }
    %c0_59 = arith.constant 0 : index
    %c0_60 = arith.constant 0 : index
    %c0_61 = arith.constant 0 : index
    %99 = vector.load %arg11[%c0_59, %c0_60, %c0_61] : memref<8x8x128xf32, #tpu.memory_space<vmem>>, vector<8x8x128xf32>
    %100 = vector.shape_cast %99 : vector<8x8x128xf32> to vector<64x128xf32>
    %c0_62 = arith.constant 0 : index
    %c0_63 = arith.constant 0 : index
    %101 = vector.load %arg5[%c0_62, %c0_63] : memref<128x8xf32, #tpu.memory_space<vmem>>, vector<128x8xf32>
    %cst_64 = arith.constant dense<0.000000e+00> : vector<64x8xf32>
    %102 = tpu.matmul %100, %101, %cst_64 {dimension_numbers = #tpu.dot_dimension_numbers<[1], [0], [0], [1], [0, 0, 1, 1], [], []>} : vector<64x128xf32>, vector<128x8xf32>, vector<64x8xf32> -> vector<64x8xf32>
    %c0_65 = arith.constant 0 : index
    %c0_66 = arith.constant 0 : index
    %103 = vector.load %arg6[%c0_65, %c0_66] : memref<1x8xf32, #tpu.memory_space<vmem>>, vector<1x8xf32>
    %104 = vector.broadcast %103 : vector<1x8xf32> to vector<64x8xf32>
    %105 = arith.addf %102, %104 : vector<64x8xf32>
    %106 = vector.shape_cast %105 : vector<64x8xf32> to vector<8x8x8xf32>
    %c0_67 = arith.constant 0 : index
    %c0_68 = arith.constant 0 : index
    %c0_69 = arith.constant 0 : index
    %107 = vector.load %arg8[%c0_67, %c0_68, %c0_69] : memref<8x8x8xf32, #tpu.memory_space<vmem>>, vector<8x8x8xf32>
    tpu.vector_store %arg8[%c0_67, %c0_68, %c0_69], %106 {strides = array<i32>} : memref<8x8x8xf32, #tpu.memory_space<vmem>>, vector<8x8x8xf32>,
    return
  }
  func.func @transform_0(%arg0: i32) -> (i32, i32, i32) {
    %c0_i32 = arith.constant 0 : i32
    %c0_i32_0 = arith.constant 0 : i32
    %c0_i32_1 = arith.constant 0 : i32
    return %arg0, %c0_i32, %c0_i32_0 : i32, i32, i32
  }
  func.func @transform_1(%arg0: i32) -> (i32, i32) {
    %c0_i32 = arith.constant 0 : i32
    %c0_i32_0 = arith.constant 0 : i32
    %c0_i32_1 = arith.constant 0 : i32
    return %c0_i32, %c0_i32_0 : i32, i32
  }
  func.func @transform_2(%arg0: i32) -> (i32, i32) {
    %c0_i32 = arith.constant 0 : i32
    %c0_i32_0 = arith.constant 0 : i32
    %c0_i32_1 = arith.constant 0 : i32
    return %c0_i32, %c0_i32_0 : i32, i32
  }
  func.func @transform_3(%arg0: i32) -> (i32, i32) {
    %c0_i32 = arith.constant 0 : i32
    %c0_i32_0 = arith.constant 0 : i32
    %c0_i32_1 = arith.constant 0 : i32
    return %c0_i32, %c0_i32_0 : i32, i32
  }
  func.func @transform_4(%arg0: i32) -> (i32, i32) {
    %c0_i32 = arith.constant 0 : i32
    %c0_i32_0 = arith.constant 0 : i32
    %c0_i32_1 = arith.constant 0 : i32
    return %c0_i32, %c0_i32_0 : i32, i32
  }
  func.func @transform_5(%arg0: i32) -> (i32, i32) {
    %c0_i32 = arith.constant 0 : i32
    %c0_i32_0 = arith.constant 0 : i32
    %c0_i32_1 = arith.constant 0 : i32
    return %c0_i32, %c0_i32_0 : i32, i32
  }
  func.func @transform_6(%arg0: i32) -> (i32, i32) {
    %c0_i32 = arith.constant 0 : i32
    %c0_i32_0 = arith.constant 0 : i32
    %c0_i32_1 = arith.constant 0 : i32
    return %c0_i32, %c0_i32_0 : i32, i32
  }
  func.func @transform_7(%arg0: i32) -> (i32, i32, i32) {
    %c0_i32 = arith.constant 0 : i32
    %c0_i32_0 = arith.constant 0 : i32
    %c0_i32_1 = arith.constant 0 : i32
    return %arg0, %c0_i32, %c0_i32_0 : i32, i32, i32
  }
  func.func @transform_8(%arg0: i32) -> (i32, i32) {
    %c0_i32 = arith.constant 0 : i32
    %c0_i32_0 = arith.constant 0 : i32
    %c0_i32_1 = arith.constant 0 : i32
    return %c0_i32, %c0_i32_0 : i32, i32
  }
}

</mosaic_0001>

<bundles_post_ra>
// kernel: tpu_custom_call.1
= control target key start
LH: loop header
LB: loop body
LE: loop exit
PB: predicated region body
PF: predicated region fallthrough
CT: control target
= control target key end

     0   :  { %14 = vsyncpa [#allocation5], 0  ;;  %s1006_s0 = inlined_call_operand.hbm [shape: f32[8,8,16], index: 0, kind: input, shape index: {}]   ;;  %s1007_s1 = inlined_call_operand.hbm [shape: f32[16,128], index: 1, kind: input, shape index: {}]   ;;  %s1008_s2 = inlined_call_operand.vmem [shape: f32[128,128], index: 2, kind: input, shape index: {}]   ;;  %s1009_s3 = inlined_call_operand.vmem [shape: f32[1,128], index: 3, kind: input, shape index: {}]   ;;  %s1010_s4 = inlined_call_operand.vmem [shape: f32[128,8], index: 4, kind: input, shape index: {}]   ;;  %s1011_s5 = inlined_call_operand.vmem [shape: f32[1,8], index: 5, kind: input, shape index: {}]   ;;  %s1012_s6 = inlined_call_operand.vmem [shape: f32[8,128], index: 6, kind: input, shape index: {}]   ;;  %s1013_s7 = inlined_call_operand.hbm [shape: f32[8,8,8], index: 7, kind: output, shape index: {0}]   ;;  %s1014_s8 = inlined_call_operand.hbm [shape: f32[8,128], index: 8, kind: output, shape index: {1}]  }
   0x1   :  { %15 = vsyncpa [#allocation8], 0 }
   0x2   :  { %16 = vsyncpa [#allocation6], 0 }
   0x3   :  { %17 = vsyncpa [#allocation11], 0  ;;  %s22_s29 = sshll.u32 %s1006_s0, 4  ;;  %s630_s30 = smov [#allocation4]   ;;  %s23_s29 = int_to_ptr.hbm [resolvable:$true] %s22_s29 }
   0x4   :  { %s24_s9 = sshll.u32 %s630_s30, 4  ;;  %s35_s12 = sshll.u32 %s1007_s1, 4  ;;  %s25_s9 = int_to_ptr.vmem [resolvable:$true] %s24_s9  ;;  %s36_s12 = int_to_ptr.hbm [resolvable:$true] %s35_s12 }
   0x5   :  { %s631_s13 = smov 128   ;;  %s632_s14 = smov 8  }
   0x6   :  { %30 = dma.hbm_to_vmem [thread:$0]  %s23_s29, 1024, %s25_s9, [#allocation5], %s631_s13, %s631_s13, %s632_s14  }
   0x7   :  { %s633_s15 = smov [#allocation7]  }
   0x8   :  { %s37_s16 = sshll.u32 %s633_s15, 4  ;;  %s38_s16 = int_to_ptr.vmem [resolvable:$true] %s37_s16 }
   0x9   :  { %43 = dma.hbm_to_vmem [thread:$0]  %s36_s12, 256, %s38_s16, [#allocation8], %s631_s13, %s631_s13, %s632_s14  }
   0xa   :  { %622 = dma.done.wait [#allocation5], 1024  }
   0xb   :  { %623 = vsyncadd [#allocation5], 4294966272 }
   0xc   :  { %624 = dma.done.wait [#allocation8], 256  }
   0xd   :  { %625 = vsyncadd [#allocation8], 4294967040  ;;  %v696_v0 = vld [vmem:[%s1008_s2 + $0x78] sm:$0xff]  ;;  %v701_v1 = vld [vmem:[%s1008_s2 + $0x70] sm:$0xff]  ;;  %vm78_vm0 = vcmask 130048   ;;  %vm447_vm1 = vcmask 64512  }
   0xe   :  { %182 = vmatpush.msra.mxu1 %v696_v0  ;;  %206 = vmatpush.msra.mxu3 %v696_v0  ;;  %v708_v2 = vld [vmem:[%s1008_s2 + $0x68] sm:$0xff]  ;;  %v715_v3 = vld [vmem:[%s1008_s2 + $0x60] sm:$0xff]  ;;  %v721_v7 = vld [vmem:[%s1008_s2 + $0x58] sm:$0xff]  ;;  %s476_s18 = sshll.u32 %s1014_s8, 4  ;;  %s635_s19 = smov [#allocation9]   ;;  %s477_s18 = int_to_ptr.hbm [resolvable:$true] %s476_s18 }
   0xf   :  { %v77_v4 = vld [vmem:[#allocation7 + $0x8] sm:$0xff]  ;;  %v76_v5 = vld [vmem:[#allocation7] sm:$0xff]  ;;  %v401_v9 = vld [vmem:[%s1010_s4 + $0x78] sm:$0xff]  ;;  %s460_s20 = sshll.u32 %s635_s19, 4  ;;  %s462_s23 = sshll.u32 %s1013_s7, 4  ;;  %s461_s20 = int_to_ptr.vmem [resolvable:$true] %s460_s20  ;;  %s463_s23 = int_to_ptr.hbm [resolvable:$true] %s462_s23 }
  0x10   :  { %183 = vmatpush.msra.mxu1 %v701_v1  ;;  %207 = vmatpush.msra.mxu3 %v701_v1  ;;  %v68_v6 = vld [vmem:[#allocation4] sm:$0xff]  ;;  %v731_v10 = vld [vmem:[%s1008_s2 + $0x50] sm:$0xff]  ;;  %v742_v12 = vld [vmem:[%s1008_s2 + $0x48] sm:$0xff] }
  0x11   :  { %117 = vmatpush.msra.mxu0 %v77_v4  ;;  %500 = vmatpush.msra.mxu2 %v77_v4  ;;  %v72_v8 = vld [vmem:[#allocation4 + $0x20] sm:$0xff]  ;;  %v400_v11 = vld [vmem:[%s1010_s4 + $0x70] sm:$0xff]  ;;  %v399_v13 = vld [vmem:[%s1010_s4 + $0x68] sm:$0xff] }
  0x12   :  { %184 = vmatpush.msra.mxu1 %v708_v2  ;;  %208 = vmatpush.msra.mxu3 %v708_v2  ;;  %v753_v14 = vld [vmem:[%s1008_s2 + $0x40] sm:$0xff]  ;;  %v764_v16 = vld [vmem:[%s1008_s2 + $0x38] sm:$0xff]  ;;  %v73_v17 = vld [vmem:[#allocation4 + $0x28] sm:$0xff] }
  0x13   :  { %118 = vmatpush.msra.mxu0 %v76_v5  ;;  %501 = vmatpush.msra.mxu2 %v76_v5  ;;  %v398_v15 = vld [vmem:[%s1010_s4 + $0x60] sm:$0xff]  ;;  %v397_v18 = vld [vmem:[%s1010_s4 + $0x58] sm:$0xff]  ;;  %v775_v19 = vld [vmem:[%s1008_s2 + $0x30] sm:$0xff] }
  0x14   :  { %185 = vmatpush.msra.mxu1 %v715_v3  ;;  %492 = vmatmul.msk.f32.vlgmr.msra.gmra.mxu0 %vm78_vm0, %v68_v6  ;;  %v396_v20 = vld [vmem:[%s1010_s4 + $0x50] sm:$0xff]  ;;  %v786_v21 = vld [vmem:[%s1008_s2 + $0x28] sm:$0xff]  ;;  %v797_v23 = vld [vmem:[%s1008_s2 + $0x20] sm:$0xff] }
  0x15   :  { %496 = vmatmul.msk.f32.vlgmr.msra.gmra.mxu2 %vm78_vm0, %v72_v8  ;;  %209 = vmatpush.msra.mxu3 %v715_v3  ;;  %v395_v22 = vld [vmem:[%s1010_s4 + $0x48] sm:$0xff]  ;;  %v394_v24 = vld [vmem:[%s1010_s4 + $0x40] sm:$0xff]  ;;  %v808_v25 = vld [vmem:[%s1008_s2 + $0x18] sm:$0xff] }
  0x16   :  { %186 = vmatpush.msra.mxu1 %v721_v7  ;;  %406 = vmatpush.msrb.mxu2 %v401_v9  ;;  %v74_v26 = vld [vmem:[#allocation4 + $0x30] sm:$0xff]  ;;  %v393_v27 = vld [vmem:[%s1010_s4 + $0x38] sm:$0xff]  ;;  %v830_v30 = vld [vmem:[%s1008_s2 + $0x8] sm:$0xff] }
  0x17   :  { %278 = vmatpush.msrb.mxu0 %v696_v0  ;;  %210 = vmatpush.msra.mxu3 %v721_v7  ;;  %v819_v28 = vld [vmem:[%s1008_s2 + $0x10] sm:$0xff]  ;;  %v838_v31 = vld [vmem:[%s1008_s2] sm:$0xff]  ;;  %v391_v33 = vld [vmem:[%s1010_s4 + $0x28] sm:$0xff] }
  0x18   :  { %187 = vmatpush.msra.mxu1 %v731_v10  ;;  %407 = vmatpush.msrb.mxu2 %v400_v11  ;;  %v392_v29 = vld [vmem:[%s1010_s4 + $0x30] sm:$0xff]  ;;  %v66_v32 = vld [vmem:[%s1012_s6] sm:$0xff]  ;;  %v75_v35 = vld [vmem:[#allocation4 + $0x38] sm:$0xff] }
  0x19   :  { %279 = vmatpush.msrb.mxu0 %v701_v1  ;;  %211 = vmatpush.msra.mxu3 %v731_v10  ;;  %v390_v34 = vld [vmem:[%s1010_s4 + $0x20] sm:$0xff]  ;;  %v389_v36 = vld [vmem:[%s1010_s4 + $0x18] sm:$0xff]  ;;  %v388_v37 = vld [vmem:[%s1010_s4 + $0x10] sm:$0xff] }
  0x1a   :  { %188 = vmatpush.msra.mxu1 %v742_v12  ;;  %408 = vmatpush.msrb.mxu2 %v399_v13  ;;  %v387_v38 = vld [vmem:[%s1010_s4 + $0x8] sm:$0xff]  ;;  %v386_v39 = vld [vmem:[%s1010_s4] sm:$0xff]  ;;  %v70_v49 = vld [vmem:[#allocation4 + $0x10] sm:$0xff] }
  0x1b   :  { %280 = vmatpush.msrb.mxu0 %v708_v2  ;;  %212 = vmatpush.msra.mxu3 %v742_v12  ;;  %v69_v40 = vld [vmem:[#allocation4 + $0x8] sm:$0xff]  ;;  %v945_v41 = vld [vmem:[%s1009_s3] ss:$0 sm:$0xff]  ;;  %v71_v60 = vld [vmem:[#allocation4 + $0x18] sm:$0xff] }
  0x1c   :  { %189 = vmatpush.msra.mxu1 %v753_v14  ;;  %409 = vmatpush.msrb.mxu2 %v398_v15  ;;  %v971_v54 = vld [vmem:[%s1011_s5] ss:$0 sm:$0xff]  ;;  %s634_s5 = smov [#allocation10]  }
  0x1d   :  { %497 = vmatmul.msk.f32.gmra.mxu2 %vm78_vm0, %v73_v17  ;;  %213 = vmatpush.msra.mxu3 %v753_v14  ;;  %s474_s0 = sshll.u32 %s634_s5, 4  ;;  %s475_s0 = int_to_ptr.vmem [resolvable:$true] %s474_s0 }
  0x1e   :  { %190 = vmatpush.msra.mxu1 %v764_v16  ;;  %410 = vmatpush.msrb.mxu2 %v397_v18 }
  0x1f   :  { %281 = vmatpush.msrb.mxu0 %v715_v3  ;;  %214 = vmatpush.msra.mxu3 %v764_v16 }
  0x20   :  { %191 = vmatpush.msra.mxu1 %v775_v19  ;;  %411 = vmatpush.msrb.mxu2 %v396_v20 }
  0x21   :  { %282 = vmatpush.msrb.mxu0 %v721_v7  ;;  %215 = vmatpush.msra.mxu3 %v775_v19 }
  0x22   :  { %192 = vmatpush.msra.mxu1 %v786_v21  ;;  %412 = vmatpush.msrb.mxu2 %v395_v22 }
  0x23   :  { %283 = vmatpush.msrb.mxu0 %v731_v10  ;;  %216 = vmatpush.msra.mxu3 %v786_v21 }
  0x24   :  { %193 = vmatpush.msra.mxu1 %v797_v23  ;;  %413 = vmatpush.msrb.mxu2 %v394_v24 }
  0x25   :  { %498 = vmatmul.msk.f32.gmra.mxu2 %vm78_vm0, %v74_v26  ;;  %217 = vmatpush.msra.mxu3 %v797_v23 }
  0x26   :  { %194 = vmatpush.msra.mxu1 %v808_v25  ;;  %414 = vmatpush.msrb.mxu2 %v393_v27 }
  0x27   :  { %284 = vmatpush.msrb.mxu0 %v742_v12  ;;  %218 = vmatpush.msra.mxu3 %v808_v25 }
  0x28   :  { %195 = vmatpush.msra.mxu1 %v819_v28  ;;  %415 = vmatpush.msrb.mxu2 %v392_v29 }
  0x29   :  { %285 = vmatpush.msrb.mxu0 %v753_v14  ;;  %219 = vmatpush.msra.mxu3 %v819_v28 }
  0x2a   :  { %196 = vmatpush.msra.mxu1 %v830_v30  ;;  %416 = vmatpush.msrb.mxu2 %v391_v33 }
  0x2b   :  { %286 = vmatpush.msrb.mxu0 %v764_v16  ;;  %220 = vmatpush.msra.mxu3 %v830_v30 }
  0x2c   :  { %197 = vmatpush.msra.mxu1 %v838_v31  ;;  %417 = vmatpush.msrb.mxu2 %v390_v34 }
  0x2d   :  { %198 = vmatmul.f32.vlgmr.msra.gmra.mxu1 %v66_v32  ;;  %287 = vmatpush.msrb.mxu0 %v775_v19 }
  0x2e   :  { %254 = vmatpush.msrb.mxu1 %v696_v0  ;;  %221 = vmatpush.msra.mxu3 %v838_v31 }
  0x2f   :  { %288 = vmatpush.msrb.mxu0 %v786_v21  ;;  %499 = vmatmul.msk.f32.gmra.mxu2 %vm78_vm0, %v75_v35 }
  0x30   :  { %230 = vmatpush.msrb.mxu3 %v696_v0  ;;  %255 = vmatpush.msrb.mxu1 %v701_v1 }
  0x31   :  { %289 = vmatpush.msrb.mxu0 %v797_v23  ;;  %418 = vmatpush.msrb.mxu2 %v389_v36 }
  0x32   :  { %231 = vmatpush.msrb.mxu3 %v701_v1  ;;  %256 = vmatpush.msrb.mxu1 %v708_v2 }
  0x33   :  { %290 = vmatpush.msrb.mxu0 %v808_v25  ;;  %419 = vmatpush.msrb.mxu2 %v388_v37 }
  0x34   :  { %232 = vmatpush.msrb.mxu3 %v708_v2  ;;  %257 = vmatpush.msrb.mxu1 %v715_v3 }
  0x35   :  { %291 = vmatpush.msrb.mxu0 %v819_v28  ;;  %420 = vmatpush.msrb.mxu2 %v387_v38 }
  0x36   :  { %233 = vmatpush.msrb.mxu3 %v715_v3  ;;  %258 = vmatpush.msrb.mxu1 %v721_v7 }
  0x37   :  { %292 = vmatpush.msrb.mxu0 %v830_v30  ;;  %421 = vmatpush.msrb.mxu2 %v386_v39 }
  0x38   :  { %234 = vmatpush.msrb.mxu3 %v721_v7  ;;  %259 = vmatpush.msrb.mxu1 %v731_v10 }
  0x39   :  { %293 = vmatpush.msrb.mxu0 %v838_v31 }
  0x3a   :  { %235 = vmatpush.msrb.mxu3 %v731_v10  ;;  %260 = vmatpush.msrb.mxu1 %v742_v12 }
  0x3b   :  { %326 = vmatpush.msra.mxu0 %v696_v0 }
  0x3c   :  { %236 = vmatpush.msrb.mxu3 %v742_v12  ;;  %261 = vmatpush.msrb.mxu1 %v753_v14 }
  0x3d   :  { %327 = vmatpush.msra.mxu0 %v701_v1 }
  0x3e   :  { %237 = vmatpush.msrb.mxu3 %v753_v14  ;;  %262 = vmatpush.msrb.mxu1 %v764_v16 }
  0x3f   :  { %328 = vmatpush.msra.mxu0 %v708_v2 }
  0x40   :  { %238 = vmatpush.msrb.mxu3 %v764_v16  ;;  %263 = vmatpush.msrb.mxu1 %v775_v19 }
  0x41   :  { %329 = vmatpush.msra.mxu0 %v715_v3 }
  0x42   :  { %239 = vmatpush.msrb.mxu3 %v775_v19  ;;  %264 = vmatpush.msrb.mxu1 %v786_v21 }
  0x43   :  { %330 = vmatpush.msra.mxu0 %v721_v7 }
  0x44   :  { %240 = vmatpush.msrb.mxu3 %v786_v21  ;;  %265 = vmatpush.msrb.mxu1 %v797_v23 }
  0x45   :  { %331 = vmatpush.msra.mxu0 %v731_v10 }
  0x46   :  { %241 = vmatpush.msrb.mxu3 %v797_v23  ;;  %266 = vmatpush.msrb.mxu1 %v808_v25 }
  0x47   :  { %332 = vmatpush.msra.mxu0 %v742_v12 }
  0x48   :  { %242 = vmatpush.msrb.mxu3 %v808_v25  ;;  %267 = vmatpush.msrb.mxu1 %v819_v28 }
  0x49   :  { %333 = vmatpush.msra.mxu0 %v753_v14 }
  0x4a   :  { %243 = vmatpush.msrb.mxu3 %v819_v28  ;;  %268 = vmatpush.msrb.mxu1 %v830_v30 }
  0x4b   :  { %334 = vmatpush.msra.mxu0 %v764_v16 }
  0x4c   :  { %244 = vmatpush.msrb.mxu3 %v830_v30  ;;  %269 = vmatpush.msrb.mxu1 %v838_v31 }
  0x4d   :  { %335 = vmatpush.msra.mxu0 %v775_v19 }
  0x4e   :  { %350 = vmatpush.msra.mxu1 %v696_v0  ;;  %245 = vmatpush.msrb.mxu3 %v838_v31 }
  0x4f   :  { %336 = vmatpush.msra.mxu0 %v786_v21 }
  0x50   :  { %351 = vmatpush.msra.mxu1 %v701_v1  ;;  %493 = vmatmul.msk.f32.gmra.mxu0 %vm78_vm0, %v69_v40 }
  0x51   :  { %337 = vmatpush.msra.mxu0 %v797_v23 }
  0x52   :  { %352 = vmatpush.msra.mxu1 %v708_v2 }
  0x53   :  { %338 = vmatpush.msra.mxu0 %v808_v25 }
  0x54   :  { %353 = vmatpush.msra.mxu1 %v715_v3 }
  0x55   :  { %339 = vmatpush.msra.mxu0 %v819_v28 }
  0x56   :  { %354 = vmatpush.msra.mxu1 %v721_v7 }
  0x57   :  { %340 = vmatpush.msra.mxu0 %v830_v30 }
  0x58   :  { %355 = vmatpush.msra.mxu1 %v731_v10  ;;  %494 = vmatmul.msk.f32.gmra.mxu0 %vm78_vm0, %v70_v49 }
  0x59   :  { %341 = vmatpush.msra.mxu0 %v838_v31 }
  0x5a   :  { %356 = vmatpush.msra.mxu1 %v742_v12 }
  0x5c   :  { %357 = vmatpush.msra.mxu1 %v753_v14 }
  0x5e   :  { %358 = vmatpush.msra.mxu1 %v764_v16 }
  0x60   :  { %359 = vmatpush.msra.mxu1 %v775_v19  ;;  %495 = vmatmul.msk.f32.gmra.mxu0 %vm78_vm0, %v71_v60 }
  0x62   :  { %360 = vmatpush.msra.mxu1 %v786_v21 }
  0x64   :  { %361 = vmatpush.msra.mxu1 %v797_v23 }
  0x66   :  { %362 = vmatpush.msra.mxu1 %v808_v25 }
  0x68   :  { %363 = vmatpush.msra.mxu1 %v819_v28 }
  0x6a   :  { %364 = vmatpush.msra.mxu1 %v830_v30 }
  0x6c   :  { %365 = vmatpush.msra.mxu1 %v838_v31 }
  0x91   :  { %v120_v42 = vpop.f32.mrf.mxu0 }
  0x92   :  { %v148_v43 = vadd.f32 %v945_v41, %v120_v42 }
  0x98   :  { %v132_v47 = vpop.f32.mrf.mxu2 }
  0x99   :  { %v152_v11 = vadd.f32 %v945_v41, %v132_v47 }
  0xa0   :  { %v135_v48 = vpop.f32.mrf.mxu2 }
  0xa1   :  { %v153_v17 = vadd.f32 %v945_v41, %v135_v48 }
  0xa8   :  { %v138_v50 = vpop.f32.mrf.mxu2 }
  0xaa   :  { %v199_v44 = vpop.f32.mrf.mxu1 }
  0xab   :  { %v200_v45 = vadd.f32 %v199_v44, %v148_v43 }
  0xad   :  { %510 = vtanh.f32 %v200_v45 }
  0xb2   :  { %v965_v51 = vpop.f32.mrf.mxu2 }
  0xb3   :  { %v511_v46 = vpop.eup %510  ;;  %v155_v29 = vadd.f32 %v945_v41, %v965_v51 }
  0xb4   :  { %222 = vmatmul.f32.vlgmr.msra.gmra.mxu3 %v511_v46  ;;  %422 = vmatmul.f32.vlgmr.msrb.gmra.mxu2 %v511_v46 }
  0xb5   :  { %302 = vmatpush.msra.mxu3 %v696_v0 }
  0xb7   :  { %303 = vmatpush.msra.mxu3 %v701_v1 }
  0xb9   :  { %304 = vmatpush.msra.mxu3 %v708_v2 }
  0xbb   :  { %305 = vmatpush.msra.mxu3 %v715_v3 }
  0xbd   :  { %306 = vmatpush.msra.mxu3 %v721_v7 }
  0xbf   :  { %307 = vmatpush.msra.mxu3 %v731_v10 }
  0xc1   :  { %308 = vmatpush.msra.mxu3 %v742_v12 }
  0xc3   :  { %309 = vmatpush.msra.mxu3 %v753_v14 }
  0xc5   :  { %310 = vmatpush.msra.mxu3 %v764_v16 }
  0xc7   :  { %311 = vmatpush.msra.mxu3 %v775_v19 }
  0xc9   :  { %312 = vmatpush.msra.mxu3 %v786_v21 }
  0xcb   :  { %313 = vmatpush.msra.mxu3 %v797_v23  ;;  %v154_v23 = vadd.f32 %v945_v41, %v138_v50 }
  0xcd   :  { %314 = vmatpush.msra.mxu3 %v808_v25  ;;  %v123_v52 = vpop.f32.mrf.mxu0 }
  0xce   :  { %v149_v53 = vadd.f32 %v945_v41, %v123_v52 }
  0xcf   :  { %315 = vmatpush.msra.mxu3 %v819_v28 }
  0xd1   :  { %316 = vmatpush.msra.mxu3 %v830_v30 }
  0xd3   :  { %317 = vmatpush.msra.mxu3 %v838_v31 }
  0xd5   :  { %v126_v61 = vpop.f32.mrf.mxu0 }
  0xd6   :  { %v150_v62 = vadd.f32 %v945_v41, %v126_v61 }
  0xdd   :  { %v129_v4 = vpop.f32.mrf.mxu0 }
  0xde   :  { %v151_v5 = vadd.f32 %v945_v41, %v129_v4 }
 0x137   :  { %v223_v55 = vpop.f32.mrf.mxu3  ;;  %v423_v56 = vpop.f32.mrf.mxu2 }
 0x138   :  { %v224_v57 = vadd.f32 %v223_v55, %v149_v53  ;;  %v424_v58 = vadd.f32 %v971_v54, %v423_v56 }
 0x13a   :  { %512 = vtanh.f32 %v224_v57  ;;  %448 = vst.msk [vmem:[#allocation9] sm:$0xff] %vm447_vm1, %v424_v58 }
 0x140   :  { %v513_v59 = vpop.eup %512 }
 0x141   :  { %246 = vmatmul.f32.vlgmr.msrb.gmra.mxu3 %v513_v59  ;;  %425 = vmatmul.f32.gmra.mxu2 %v513_v59 }
 0x1c4   :  { %v247_v63 = vpop.f32.mrf.mxu3  ;;  %v426_v0 = vpop.f32.mrf.mxu2 }
 0x1c5   :  { %v248_v1 = vadd.f32 %v247_v63, %v150_v62  ;;  %v427_v2 = vadd.f32 %v971_v54, %v426_v0 }
 0x1c7   :  { %514 = vtanh.f32 %v248_v1  ;;  %449 = vst.msk [vmem:[#allocation9 + $0x8] sm:$0xff] %vm447_vm1, %v427_v2 }
 0x1cd   :  { %v515_v3 = vpop.eup %514 }
 0x1ce   :  { %270 = vmatmul.f32.vlgmr.msrb.gmra.mxu1 %v515_v3  ;;  %428 = vmatmul.f32.gmra.mxu2 %v515_v3 }
 0x24b   :  { %v271_v6 = vpop.f32.mrf.mxu1 }
 0x24c   :  { %v272_v7 = vadd.f32 %v271_v6, %v151_v5 }
 0x24e   :  { %516 = vtanh.f32 %v272_v7 }
 0x251   :  { %v429_v8 = vpop.f32.mrf.mxu2 }
 0x252   :  { %v430_v9 = vadd.f32 %v971_v54, %v429_v8 }
 0x254   :  { %v517_v10 = vpop.eup %516  ;;  %450 = vst.msk [vmem:[#allocation9 + $0x10] sm:$0xff] %vm447_vm1, %v430_v9 }
 0x255   :  { %294 = vmatmul.f32.vlgmr.msrb.gmra.mxu0 %v517_v10  ;;  %431 = vmatmul.f32.gmra.mxu2 %v517_v10 }
 0x2d2   :  { %v295_v12 = vpop.f32.mrf.mxu0 }
 0x2d3   :  { %v296_v13 = vadd.f32 %v295_v12, %v152_v11 }
 0x2d5   :  { %518 = vtanh.f32 %v296_v13 }
 0x2d8   :  { %v432_v14 = vpop.f32.mrf.mxu2 }
 0x2d9   :  { %v433_v15 = vadd.f32 %v971_v54, %v432_v14 }
 0x2db   :  { %v519_v16 = vpop.eup %518  ;;  %451 = vst.msk [vmem:[#allocation9 + $0x18] sm:$0xff] %vm447_vm1, %v433_v15 }
 0x2dc   :  { %318 = vmatmul.f32.vlgmr.msra.gmra.mxu3 %v519_v16  ;;  %434 = vmatmul.f32.gmra.mxu2 %v519_v16 }
 0x35f   :  { %v319_v18 = vpop.f32.mrf.mxu3  ;;  %v435_v19 = vpop.f32.mrf.mxu2 }
 0x360   :  { %v320_v20 = vadd.f32 %v319_v18, %v153_v17  ;;  %v436_v21 = vadd.f32 %v971_v54, %v435_v19 }
 0x362   :  { %520 = vtanh.f32 %v320_v20  ;;  %452 = vst.msk [vmem:[#allocation9 + $0x20] sm:$0xff] %vm447_vm1, %v436_v21 }
 0x368   :  { %v521_v22 = vpop.eup %520 }
 0x369   :  { %342 = vmatmul.f32.vlgmr.msra.gmra.mxu0 %v521_v22  ;;  %437 = vmatmul.f32.gmra.mxu2 %v521_v22 }
 0x3e6   :  { %v343_v24 = vpop.f32.mrf.mxu0 }
 0x3e7   :  { %v344_v25 = vadd.f32 %v343_v24, %v154_v23 }
 0x3e9   :  { %522 = vtanh.f32 %v344_v25 }
 0x3ec   :  { %v438_v26 = vpop.f32.mrf.mxu2 }
 0x3ed   :  { %v439_v27 = vadd.f32 %v971_v54, %v438_v26 }
 0x3ef   :  { %v523_v28 = vpop.eup %522  ;;  %453 = vst.msk [vmem:[#allocation9 + $0x28] sm:$0xff] %vm447_vm1, %v439_v27 }
 0x3f0   :  { %366 = vmatmul.f32.vlgmr.msra.gmra.mxu1 %v523_v28  ;;  %440 = vmatmul.f32.gmra.mxu2 %v523_v28 }
 0x46d   :  { %v367_v30 = vpop.f32.mrf.mxu1 }
 0x46e   :  { %v368_v31 = vadd.f32 %v367_v30, %v155_v29 }
 0x470   :  { %524 = vtanh.f32 %v368_v31 }
 0x473   :  { %v441_v32 = vpop.f32.mrf.mxu2 }
 0x474   :  { %v442_v33 = vadd.f32 %v971_v54, %v441_v32 }
 0x476   :  { %v525_v34 = vpop.eup %524  ;;  %454 = vst.msk [vmem:[#allocation9 + $0x30] sm:$0xff] %vm447_vm1, %v442_v33 }
 0x477   :  { %377 = vst [vmem:[#allocation10] sm:$0xff] %v525_v34  ;;  %443 = vmatmul.f32.gmra.mxu2 %v525_v34 }
 0x478   :  { %479 = dma.vmem_to_hbm [thread:$0]  %s475_s0, 128, %s477_s18, [#allocation11]  }
 0x4fa   :  { %v444_v35 = vpop.f32.mrf.mxu2 }
 0x4fb   :  { %v445_v36 = vadd.f32 %v971_v54, %v444_v35 }
 0x4fd   :  { %455 = vst.msk [vmem:[#allocation9 + $0x38] sm:$0xff] %vm447_vm1, %v445_v36 }
 0x4fe   :  { %468 = dma.vmem_to_hbm [thread:$0]  %s461_s20, 1024, %s463_s23, [#allocation6], %s631_s13, %s631_s13, %s632_s14  }
 0x4ff   :  { %626 = dma.done.wait [#allocation6], 1024  }
 0x500   :  { %627 = vsyncadd [#allocation6], 4294966272 }
 0x501   :  { %628 = dma.done.wait [#allocation11], 128  }
 0x502   :  { %629 = vsyncadd [#allocation11], 4294967168 }
 0x503   :  { %488 = vsyncpa [#allocation5], 1 }
 0x504   :  { %489 = vsyncpa [#allocation8], 1 }
 0x505   :  { %490 = vsyncpa [#allocation6], 1 }
 0x506   :  { %491 = vsyncpa [#allocation11], 1 }

</bundles_post_ra>
